<compile_context>
chip_gen: v6e
topology: v6e:2x2x1
jax: 0.10.0
libtpu: 0.0.40
codegen_flags: <defaults>
</compile_context>

<pallas_src>
import jax
import jax.numpy as jnp
from jax.experimental import pallas as pl
from jax.experimental.pallas import tpu as pltpu


def _round_up(x, m):
    return (x + m - 1) // m * m


def ffn_kernel(x_ref, w1_ref, b1_ref, w2_ref, b2_ref, o_ref):
    # fc1: cast activations to bf16 at the dot boundary; f32 MXU accumulation.
    h = jnp.dot(x_ref[...].astype(jnp.bfloat16), w1_ref[...],
                preferred_element_type=jnp.float32)
    # Bias + ReLU in f32 on the VPU (v5e has no bf16 VPU/EUP).
    h = jnp.maximum(h + b1_ref[...], 0.0)
    # fc2: re-cast the intermediate to bf16 only for the MXU.
    y = jnp.dot(h.astype(jnp.bfloat16), w2_ref[...],
                preferred_element_type=jnp.float32)
    y = y + b2_ref[...]
    # Sigmoid: exp and approx reciprocal both land on the EUP slot.
    # (Use exact division / jax.nn.sigmoid if bitwise parity with torch is needed.)
    o_ref[...] = pl.reciprocal(1.0 + jnp.exp(-y), approx=True)


def prepack_ffn_params(w1, b1, w2, b2):
    """One-time pre-pack at model init: pad hidden/output feature dims to
    lane-dense multiples of 128 and cast weights to bf16.  Per-call forward
    then does no weight-side padding/cast HBM traffic.

    w1: [in, hidden], b1: [hidden], w2: [hidden, out], b2: [out]
    (weights stored pre-transposed vs. PyTorch's [out, in]).
    """
    in_size, hidden = w1.shape
    out_size = w2.shape[1]
    hid_p = _round_up(hidden, 128)
    out_p = _round_up(out_size, 128)
    # Note: if in_size is not a multiple of 128 in production, fold K padding
    # into this prepack AND into the stored x layout -- never per call.
    w1_p = jnp.zeros((in_size, hid_p), jnp.bfloat16).at[:, :hidden].set(
        w1.astype(jnp.bfloat16))
    w2_p = jnp.zeros((hid_p, out_p), jnp.bfloat16).at[:hidden, :out_size].set(
        w2.astype(jnp.bfloat16))
    b1_p = jnp.zeros((1, hid_p), jnp.float32).at[0, :hidden].set(
        b1.astype(jnp.float32))
    b2_p = jnp.zeros((1, out_p), jnp.float32).at[0, :out_size].set(
        b2.astype(jnp.float32))
    return (w1_p, b1_p, w2_p, b2_p), out_size


def ffn_forward(x, packed_params, out_size, *, block_m=256):
    """x: [B, in] f32, packed_params from prepack_ffn_params -> [B, out] f32."""
    w1_p, b1_p, w2_p, b2_p = packed_params
    B, in_size = x.shape
    hid_p = w1_p.shape[1]
    out_p = w2_p.shape[1]

    # Pad batch to a multiple of 16 (full bf16 sublane packing on the MXU LHS)
    # and, when possible, give the batch axis >= 2 grid steps so both v7x
    # TensorCores get work (free on v5e/v6e).
    b_p = _round_up(B, 16)
    tm = min(block_m, b_p)
    if b_p // tm < 2 and b_p >= 16:
        tm = b_p // 2          # b_p is a multiple of 16 -> tm multiple of 8
    b_p = _round_up(b_p, tm)

    x_p = x.astype(jnp.float32)
    if b_p != B:
        # Batch-only zero pad (f32, no dtype cast); padded rows are sliced off.
        x_p = jnp.zeros((b_p, in_size), jnp.float32).at[:B].set(x_p)

    grid = (b_p // tm,)

    # Explicit VMEM budget: x/out tiles double-buffered, weights single
    # buffered, f32 intermediate as headroom; keeps v7x (64 MiB) comfortable.
    need = (2 * tm * in_size * 4 + 2 * tm * out_p * 4
            + in_size * hid_p * 2 + hid_p * out_p * 2
            + (hid_p + out_p) * 4 + tm * hid_p * 4)
    vmem_limit = int(min(max(2 * need, 16 * 1024 * 1024), 96 * 1024 * 1024))

    def call(single_buffer_weights):
        extra = ({"pipeline_mode": pl.Buffered(1)}
                 if single_buffer_weights else {})
        in_specs = [
            # x: stream row tiles across the batch grid axis (f32 in VMEM).
            pl.BlockSpec((tm, in_size), lambda i: (i, 0)),
            # Weights / biases: constant index_map -> VMEM-resident across
            # steps; single-buffered when supported.
            pl.BlockSpec((in_size, hid_p), lambda i: (0, 0), **extra),
            pl.BlockSpec((1, hid_p), lambda i: (0, 0), **extra),
            pl.BlockSpec((hid_p, out_p), lambda i: (0, 0), **extra),
            pl.BlockSpec((1, out_p), lambda i: (0, 0), **extra),
        ]
        return pl.pallas_call(
            ffn_kernel,
            out_shape=jax.ShapeDtypeStruct((b_p, out_p), jnp.float32),
            grid=grid,
            in_specs=in_specs,
            out_specs=pl.BlockSpec((tm, out_p), lambda i: (i, 0)),
            compiler_params=pltpu.CompilerParams(
                dimension_semantics=("parallel",),
                vmem_limit_bytes=vmem_limit),
        )(x_p, w1_p, b1_p, w2_p, b2_p)

    try:
        out_padded = call(True)
    except Exception:
        # Fallback for jax versions where pipeline_mode=pl.Buffered(1) is not
        # accepted on the TPU pipeline: default (double-buffered) residency.
        out_padded = call(False)

    return out_padded[:B, :out_size]


if __name__ == "__main__":
    # Small shapes implied by the module: Linear(input_size, hidden_size),
    # Linear(hidden_size, output_size).
    B, input_size, hidden_size, output_size = 8, 32, 64, 16

    key = jax.random.PRNGKey(0)
    kx, kw1, kb1, kw2, kb2 = jax.random.split(key, 5)

    x = jax.random.normal(kx, (B, input_size), dtype=jnp.float32)

    # Deterministic parameter init (mimics PyTorch's uniform(-1/sqrt(fan_in), ...)).
    lim1 = 1.0 / jnp.sqrt(jnp.float32(input_size))
    lim2 = 1.0 / jnp.sqrt(jnp.float32(hidden_size))
    # Stored as [in, out] (transpose of PyTorch's [out, in]) for direct matmul.
    w1 = jax.random.uniform(kw1, (input_size, hidden_size), jnp.float32, -lim1, lim1)
    b1 = jax.random.uniform(kb1, (hidden_size,), jnp.float32, -lim1, lim1)
    w2 = jax.random.uniform(kw2, (hidden_size, output_size), jnp.float32, -lim2, lim2)
    b2 = jax.random.uniform(kb2, (output_size,), jnp.float32, -lim2, lim2)

    # One-time pre-pack (off the per-forward path).
    packed, out_size = prepack_ffn_params(w1, b1, w2, b2)
    packed = jax.block_until_ready(packed)

    out = ffn_forward(x, packed, out_size)
    out = jax.block_until_ready(out)

    # Reference in plain f32 JAX (same math as the PyTorch forward). Tolerance
    # is loosened because the kernel feeds the MXU bf16 (f32 accumulation) and
    # uses the approximate EUP reciprocal for the sigmoid.
    ref = jax.nn.sigmoid(jnp.maximum(x @ w1 + b1[None, :], 0.0) @ w2 + b2[None, :])
    assert out.shape == (B, output_size)
    assert jnp.allclose(out, ref, atol=2e-2, rtol=2e-2), (
        float(jnp.max(jnp.abs(out - ref))))

    print("KERNEL_OK")
</pallas_src>

<mosaic_0001>
module attributes {stable_mosaic.version = 11 : i64} {
  func.func @ffn_kernel(%arg0: i32, %arg1: memref<8x32xf32, #tpu.memory_space<vmem>>, %arg2: memref<32x128xbf16, #tpu.memory_space<vmem>>, %arg3: memref<1x128xf32, #tpu.memory_space<vmem>>, %arg4: memref<128x128xbf16, #tpu.memory_space<vmem>>, %arg5: memref<1x128xf32, #tpu.memory_space<vmem>>, %arg6: memref<8x128xf32, #tpu.memory_space<vmem>>) attributes {dimension_semantics = [#tpu.dimension_semantics<parallel>], iteration_bounds = array<i64: 2>, scalar_prefetch = 0 : i64, scratch_operands = 0 : i64, tpu.core_type = #tpu.core_type<tc>, window_params = [{transform_indices = @transform_0, window_bounds = array<i64: 8, 32>}, {pipeline_mode = #tpu.pipeline_mode<synchronous>, transform_indices = @transform_1, window_bounds = array<i64: 32, 128>}, {pipeline_mode = #tpu.pipeline_mode<synchronous>, transform_indices = @transform_2, window_bounds = array<i64: 1, 128>}, {pipeline_mode = #tpu.pipeline_mode<synchronous>, transform_indices = @transform_3, window_bounds = array<i64: 128, 128>}, {pipeline_mode = #tpu.pipeline_mode<synchronous>, transform_indices = @transform_4, window_bounds = array<i64: 1, 128>}, {transform_indices = @transform_5, window_bounds = array<i64: 8, 128>}]} {
    %c0 = arith.constant 0 : index
    %c0_0 = arith.constant 0 : index
    %0 = vector.load %arg1[%c0, %c0_0] : memref<8x32xf32, #tpu.memory_space<vmem>>, vector<8x32xf32>
    %1 = arith.truncf %0 : vector<8x32xf32> to vector<8x32xbf16>
    %c0_1 = arith.constant 0 : index
    %c0_2 = arith.constant 0 : index
    %2 = vector.load %arg2[%c0_1, %c0_2] : memref<32x128xbf16, #tpu.memory_space<vmem>>, vector<32x128xbf16>
    %cst = arith.constant dense<0.000000e+00> : vector<8x128xf32>
    %3 = tpu.matmul %1, %2, %cst {dimension_numbers = #tpu.dot_dimension_numbers<[1], [0], [0], [1], [0, 0, 1, 1], [], []>} : vector<8x32xbf16>, vector<32x128xbf16>, vector<8x128xf32> -> vector<8x128xf32>
    %c0_3 = arith.constant 0 : index
    %c0_4 = arith.constant 0 : index
    %4 = vector.load %arg3[%c0_3, %c0_4] : memref<1x128xf32, #tpu.memory_space<vmem>>, vector<1x128xf32>
    %5 = vector.broadcast %4 : vector<1x128xf32> to vector<8x128xf32>
    %6 = arith.addf %3, %5 : vector<8x128xf32>
    %cst_5 = arith.constant 0.000000e+00 : f32
    %7 = vector.broadcast %cst_5 : f32 to vector<8x128xf32>
    %8 = arith.maximumf %6, %7 : vector<8x128xf32>
    %9 = arith.truncf %8 : vector<8x128xf32> to vector<8x128xbf16>
    %c0_6 = arith.constant 0 : index
    %c0_7 = arith.constant 0 : index
    %10 = vector.load %arg4[%c0_6, %c0_7] : memref<128x128xbf16, #tpu.memory_space<vmem>>, vector<128x128xbf16>
    %cst_8 = arith.constant dense<0.000000e+00> : vector<8x128xf32>
    %11 = tpu.matmul %9, %10, %cst_8 {dimension_numbers = #tpu.dot_dimension_numbers<[1], [0], [0], [1], [0, 0, 1, 1], [], []>} : vector<8x128xbf16>, vector<128x128xbf16>, vector<8x128xf32> -> vector<8x128xf32>
    %c0_9 = arith.constant 0 : index
    %c0_10 = arith.constant 0 : index
    %12 = vector.load %arg5[%c0_9, %c0_10] : memref<1x128xf32, #tpu.memory_space<vmem>>, vector<1x128xf32>
    %13 = vector.broadcast %12 : vector<1x128xf32> to vector<8x128xf32>
    %14 = arith.addf %11, %13 : vector<8x128xf32>
    %cst_11 = arith.constant 0.000000e+00 : f32
    %15 = vector.broadcast %cst_11 : f32 to vector<8x128xf32>
    %16 = arith.subf %15, %14 : vector<8x128xf32>
    %17 = math.exp %16 : vector<8x128xf32>
    %cst_12 = arith.constant 1.000000e+00 : f32
    %18 = vector.broadcast %cst_12 : f32 to vector<8x128xf32>
    %19 = arith.addf %18, %17 : vector<8x128xf32>
    %20 = tpu.reciprocal %19 {approx = true} : vector<8x128xf32> -> vector<8x128xf32>
    %c0_13 = arith.constant 0 : index
    %c0_14 = arith.constant 0 : index
    %21 = vector.load %arg6[%c0_13, %c0_14] : memref<8x128xf32, #tpu.memory_space<vmem>>, vector<8x128xf32>
    tpu.vector_store %arg6[%c0_13, %c0_14], %20 {strides = array<i32>} : memref<8x128xf32, #tpu.memory_space<vmem>>, vector<8x128xf32>,
    return
  }
  func.func @transform_0(%arg0: i32) -> (i32, i32) {
    %c0_i32 = arith.constant 0 : i32
    %c0_i32_0 = arith.constant 0 : i32
    return %arg0, %c0_i32 : i32, i32
  }
  func.func @transform_1(%arg0: i32) -> (i32, i32) {
    %c0_i32 = arith.constant 0 : i32
    %c0_i32_0 = arith.constant 0 : i32
    %c0_i32_1 = arith.constant 0 : i32
    return %c0_i32, %c0_i32_0 : i32, i32
  }
  func.func @transform_2(%arg0: i32) -> (i32, i32) {
    %c0_i32 = arith.constant 0 : i32
    %c0_i32_0 = arith.constant 0 : i32
    %c0_i32_1 = arith.constant 0 : i32
    return %c0_i32, %c0_i32_0 : i32, i32
  }
  func.func @transform_3(%arg0: i32) -> (i32, i32) {
    %c0_i32 = arith.constant 0 : i32
    %c0_i32_0 = arith.constant 0 : i32
    %c0_i32_1 = arith.constant 0 : i32
    return %c0_i32, %c0_i32_0 : i32, i32
  }
  func.func @transform_4(%arg0: i32) -> (i32, i32) {
    %c0_i32 = arith.constant 0 : i32
    %c0_i32_0 = arith.constant 0 : i32
    %c0_i32_1 = arith.constant 0 : i32
    return %c0_i32, %c0_i32_0 : i32, i32
  }
  func.func @transform_5(%arg0: i32) -> (i32, i32) {
    %c0_i32 = arith.constant 0 : i32
    %c0_i32_0 = arith.constant 0 : i32
    return %arg0, %c0_i32 : i32, i32
  }
}

module attributes {stable_mosaic.version = 11 : i64} {
  func.func @ffn_kernel(%arg0: i32, %arg1: memref<8x32xf32, #tpu.memory_space<vmem>>, %arg2: memref<32x128xbf16, #tpu.memory_space<vmem>>, %arg3: memref<1x128xf32, #tpu.memory_space<vmem>>, %arg4: memref<128x128xbf16, #tpu.memory_space<vmem>>, %arg5: memref<1x128xf32, #tpu.memory_space<vmem>>, %arg6: memref<8x128xf32, #tpu.memory_space<vmem>>) attributes {dimension_semantics = [#tpu.dimension_semantics<parallel>], iteration_bounds = array<i64: 2>, scalar_prefetch = 0 : i64, scratch_operands = 0 : i64, tpu.core_type = #tpu.core_type<tc>, window_params = [{transform_indices = @transform_0, window_bounds = array<i64: 8, 32>}, {pipeline_mode = #tpu.pipeline_mode<synchronous>, transform_indices = @transform_1, window_bounds = array<i64: 32, 128>}, {pipeline_mode = #tpu.pipeline_mode<synchronous>, transform_indices = @transform_2, window_bounds = array<i64: 1, 128>}, {pipeline_mode = #tpu.pipeline_mode<synchronous>, transform_indices = @transform_3, window_bounds = array<i64: 128, 128>}, {pipeline_mode = #tpu.pipeline_mode<synchronous>, transform_indices = @transform_4, window_bounds = array<i64: 1, 128>}, {transform_indices = @transform_5, window_bounds = array<i64: 8, 128>}]} {
    %c0 = arith.constant 0 : index
    %c0_0 = arith.constant 0 : index
    %0 = vector.load %arg1[%c0, %c0_0] : memref<8x32xf32, #tpu.memory_space<vmem>>, vector<8x32xf32>
    %1 = arith.truncf %0 : vector<8x32xf32> to vector<8x32xbf16>
    %c0_1 = arith.constant 0 : index
    %c0_2 = arith.constant 0 : index
    %2 = vector.load %arg2[%c0_1, %c0_2] : memref<32x128xbf16, #tpu.memory_space<vmem>>, vector<32x128xbf16>
    %cst = arith.constant dense<0.000000e+00> : vector<8x128xf32>
    %3 = tpu.matmul %1, %2, %cst {dimension_numbers = #tpu.dot_dimension_numbers<[1], [0], [0], [1], [0, 0, 1, 1], [], []>} : vector<8x32xbf16>, vector<32x128xbf16>, vector<8x128xf32> -> vector<8x128xf32>
    %c0_3 = arith.constant 0 : index
    %c0_4 = arith.constant 0 : index
    %4 = vector.load %arg3[%c0_3, %c0_4] : memref<1x128xf32, #tpu.memory_space<vmem>>, vector<1x128xf32>
    %5 = vector.broadcast %4 : vector<1x128xf32> to vector<8x128xf32>
    %6 = arith.addf %3, %5 : vector<8x128xf32>
    %cst_5 = arith.constant 0.000000e+00 : f32
    %7 = vector.broadcast %cst_5 : f32 to vector<8x128xf32>
    %8 = arith.maximumf %6, %7 : vector<8x128xf32>
    %9 = arith.truncf %8 : vector<8x128xf32> to vector<8x128xbf16>
    %c0_6 = arith.constant 0 : index
    %c0_7 = arith.constant 0 : index
    %10 = vector.load %arg4[%c0_6, %c0_7] : memref<128x128xbf16, #tpu.memory_space<vmem>>, vector<128x128xbf16>
    %cst_8 = arith.constant dense<0.000000e+00> : vector<8x128xf32>
    %11 = tpu.matmul %9, %10, %cst_8 {dimension_numbers = #tpu.dot_dimension_numbers<[1], [0], [0], [1], [0, 0, 1, 1], [], []>} : vector<8x128xbf16>, vector<128x128xbf16>, vector<8x128xf32> -> vector<8x128xf32>
    %c0_9 = arith.constant 0 : index
    %c0_10 = arith.constant 0 : index
    %12 = vector.load %arg5[%c0_9, %c0_10] : memref<1x128xf32, #tpu.memory_space<vmem>>, vector<1x128xf32>
    %13 = vector.broadcast %12 : vector<1x128xf32> to vector<8x128xf32>
    %14 = arith.addf %11, %13 : vector<8x128xf32>
    %cst_11 = arith.constant 0.000000e+00 : f32
    %15 = vector.broadcast %cst_11 : f32 to vector<8x128xf32>
    %16 = arith.subf %15, %14 : vector<8x128xf32>
    %17 = math.exp %16 : vector<8x128xf32>
    %cst_12 = arith.constant 1.000000e+00 : f32
    %18 = vector.broadcast %cst_12 : f32 to vector<8x128xf32>
    %19 = arith.addf %18, %17 : vector<8x128xf32>
    %20 = tpu.reciprocal %19 {approx = true} : vector<8x128xf32> -> vector<8x128xf32>
    %c0_13 = arith.constant 0 : index
    %c0_14 = arith.constant 0 : index
    %21 = vector.load %arg6[%c0_13, %c0_14] : memref<8x128xf32, #tpu.memory_space<vmem>>, vector<8x128xf32>
    tpu.vector_store %arg6[%c0_13, %c0_14], %20 {strides = array<i32>} : memref<8x128xf32, #tpu.memory_space<vmem>>, vector<8x128xf32>,
    return
  }
  func.func @transform_0(%arg0: i32) -> (i32, i32) {
    %c0_i32 = arith.constant 0 : i32
    %c0_i32_0 = arith.constant 0 : i32
    return %arg0, %c0_i32 : i32, i32
  }
  func.func @transform_1(%arg0: i32) -> (i32, i32) {
    %c0_i32 = arith.constant 0 : i32
    %c0_i32_0 = arith.constant 0 : i32
    %c0_i32_1 = arith.constant 0 : i32
    return %c0_i32, %c0_i32_0 : i32, i32
  }
  func.func @transform_2(%arg0: i32) -> (i32, i32) {
    %c0_i32 = arith.constant 0 : i32
    %c0_i32_0 = arith.constant 0 : i32
    %c0_i32_1 = arith.constant 0 : i32
    return %c0_i32, %c0_i32_0 : i32, i32
  }
  func.func @transform_3(%arg0: i32) -> (i32, i32) {
    %c0_i32 = arith.constant 0 : i32
    %c0_i32_0 = arith.constant 0 : i32
    %c0_i32_1 = arith.constant 0 : i32
    return %c0_i32, %c0_i32_0 : i32, i32
  }
  func.func @transform_4(%arg0: i32) -> (i32, i32) {
    %c0_i32 = arith.constant 0 : i32
    %c0_i32_0 = arith.constant 0 : i32
    %c0_i32_1 = arith.constant 0 : i32
    return %c0_i32, %c0_i32_0 : i32, i32
  }
  func.func @transform_5(%arg0: i32) -> (i32, i32) {
    %c0_i32 = arith.constant 0 : i32
    %c0_i32_0 = arith.constant 0 : i32
    return %arg0, %c0_i32 : i32, i32
  }
}

</mosaic_0001>

<bundles_post_ra>
// kernel: tpu_custom_call.1
= control target key start
LH: loop header
LB: loop body
LE: loop exit
PB: predicated region body
PF: predicated region fallthrough
CT: control target
= control target key end

     0   :  { %10 = vsyncpa [#allocation3], 0  ;;  %s1084_s0 = inlined_call_operand.hbm [shape: f32[16,32], index: 0, kind: input, shape index: {}]   ;;  %s1085_s1 = inlined_call_operand.hbm [shape: bf16[32,128], index: 1, kind: input, shape index: {}]   ;;  %s1086_s2 = inlined_call_operand.vmem [shape: f32[1,128], index: 2, kind: input, shape index: {}]   ;;  %s1087_s3 = inlined_call_operand.hbm [shape: bf16[128,128], index: 3, kind: input, shape index: {}]   ;;  %s1088_s4 = inlined_call_operand.vmem [shape: f32[1,128], index: 4, kind: input, shape index: {}]   ;;  %s1089_s5 = inlined_call_operand.hbm [shape: f32[16,128], index: 5, kind: output, shape index: {}]  }
   0x1   :  { %12 = vsyncpa [#allocation3 + $0x1], 0 }
   0x2   :  { %13 = vsyncpa [#allocation6], 0 }
   0x3   :  { %14 = vsyncpa [#allocation4], 0 }
   0x4   :  { %16 = vsyncpa [#allocation4 + $0x1], 0  ;;  %s903_s18 = smov 0   ;;  %s905_s19 = smov 0  }
   0x5   :  { %s907_s20 = smov 0   ;;  %s909_s21 = smov 0  }
   0x6 LB: > { %s924_s22 = sadd.s32 4294967295, %s863_s21   ;;  %s561_s23 = sadd.s32 4294967294, %s863_s21   ;;  %s863_s21 = sphi %s909_s21, %s1111_s21   ;;  %s859_s20 = sphi %s907_s20, %s1110_s20   ;;  %s855_s19 = sphi %s905_s19, %s1109_s19   ;;  %s851_s18 = sphi %s903_s18, %s1108_s18  }
   0x7   : > { %p42_p0 = scmp.ne.s32.totalorder %s855_s19, %s851_s18  ;;  %p1090_p1 = scmp.eq.s32.totalorder %s924_s22, 0 }
   0x8   : > { %p156_p3 = scmp.eq.s32.totalorder %s561_s23, 1  ;;  %p562_p5 = scmp.ge.s32.totalorder %s863_s21, 1 }
   0x9   : > { %p933_p4 = por %p1090_p1, %p42_p0  ;;  %p163_p7 = scmp.lt.s32.totalorder %s863_s21, 3 }
   0xa   : > { %p938_p6 = por %p156_p3, %p42_p0  ;;  %s865_s27 = smov [#allocation5]  }
   0xb   : > { %s1094_s24 = scalar_select %p933_p4, 1, 0 }
   0xc   : > { %s1095_s25 = scalar_select %p938_p6, 1, 0 }
   0xd   : > { %p943_p8 = pnand %p562_p5, %p163_p7  ;;  %s175_s28 = sshll.u32 %s865_s27, 4  ;;  %s176_s28 = int_to_ptr.vmem [resolvable:$true] %s175_s28 }
   0xe   : > { %s866_s30 = smov [#allocation7]   ;;  %s726_s7 = scalar_lea.vmem %s176_s28, 256 }
   0xf   : > { %s1096_s26 = scalar_select %p943_p8, 1, 0 }
  0x10   : > { %p642_p9 = pneg %p943_p8  ;;  %s191_s6 = sshll.u32 %s866_s30, 4  ;;  %s192_s6 = int_to_ptr.vmem [resolvable:$true] %s191_s6 }
  0x11   : > { %p727_p13 = scmp.ne.s32.totalorder %s176_s28, %s726_s7  ;;  %p734_p5 = scmp.lt.s32.totalorder %s176_s28, %s176_s28 }
  0x12   : > { %p952_p11 = pnand %p642_p9, %p1090_p1  ;;  %p735_p7 = scmp.lt.s32.totalorder %s726_s7, %s726_s7 }
  0x14   : > { %p717_p12 = pneg %p952_p11  ;;  %p736_p10 = por %p735_p7, %p734_p5 }
  0x16   : > { %p729_p0 = pnand %p727_p13, %p717_p12 }
  0x18   : > { %p730_p3 = pneg %p729_p0 }
  0x1a   : > { %p737_p9 = pnand %p736_p10, %p730_p3 }
  0x1c   : > { %740 = shalt.err (!%p737_p9)
}
  0x1d   : > { %s867_s8 = smov 64   ;;  %s868_s9 = smov 4  }
  0x1e   : > { %645 = dma.hbm_to_vmem [thread:$0]  (!%p952_p11), %s1085_s1, 256, %s176_s28, [#allocation6], %s867_s8, %s867_s8, %s868_s9  }
  0x1f   : > { %s752_s12 = scalar_lea.vmem %s192_s6, 1024  ;;  %p760_p2 = scmp.lt.s32.totalorder %s192_s6, %s192_s6 }
  0x20   : > { %p753_p1 = scmp.ne.s32.totalorder %s192_s6, %s752_s12  ;;  %p761_p6 = scmp.lt.s32.totalorder %s752_s12, %s752_s12 }
  0x22   : > { %p755_p13 = pnand %p753_p1, %p717_p12  ;;  %p762_p5 = por %p761_p6, %p760_p2 }
  0x24   : > { %p756_p0 = pneg %p755_p13 }
  0x26   : > { %p763_p10 = pnand %p762_p5, %p756_p0 }
  0x28   : > { %766 = shalt.err (!%p763_p10)
}
  0x29   : > { %648 = dma.hbm_to_vmem [thread:$0]  (!%p952_p11), %s1087_s3, 1024, %s192_s6, [#allocation6], %s867_s8, %s867_s8, %s868_s9  }
  0x2a   : > { %s975_s15 = sadd.s32 1, %s863_s21   ;;  %s29_s16 = sadd.s32 1, %s859_s20 }
  0x2b   : > { %s26_s17 = ssub.s32 %s863_s21, %s975_s15  ;;  %p36_p1 = scmp.ne.s32.totalorder %s859_s20, %s855_s19 }
  0x2c   : > { %p27_p2 = scmp.eq.s32.totalorder %s26_s17, 0  ;;  %p37_p6 = scmp.eq.s32.totalorder %s863_s21, 0 }
  0x2d   : > { %p1098_p12 = scmp.eq.s32.totalorder %s924_s22, 1  ;;  %p659_p7 = scmp.lt.s32.totalorder %s863_s21, 2 }
  0x2e   : > { %s991_s27 = scalar_select %p27_p2, %s859_s20, %s29_s16  }
  0x2f   : > { %p985_p3 = por %p1098_p12, %p36_p1  ;;  %p38_p9 = por %p37_p6, %p36_p1 }
  0x30   : > { %s208_s28 = sand.u32 1, %s859_s20   ;;  %s567_s30 = sshll.u32 %s863_s21, 7 }
  0x31   : > { %s1099_s23 = scalar_select %p985_p3, 1, 0 }
  0x32   : > { %s566_s29 = sshll.u32 %s208_s28, 3  ;;  %s998_s8 = scalar_lea.hbm %s1084_s0, %s567_s30 }
  0x33   : > { %s212_s9 = scalar_lea.vmem [#allocation2], %s566_s29  ;;  %p1000_p11 = pnand %p659_p7, %p38_p9 }
  0x34   : > { %s219_s10 = sshll.u32 %s212_s9, 4  ;;  %s209_s12 = scalar_lea.sflag [#allocation3], %s208_s28  ;;  %s220_s10 = int_to_ptr.vmem [resolvable:$true] %s219_s10 }
  0x35   : > { %s767_s13 = scalar_lea.hbm %s998_s8, 128  ;;  %p769_p0 = pneg %p1000_p11 }
  0x36   : > { %p768_p13 = scmp.ne.s32.totalorder %s998_s8, %s767_s13  ;;  %s772_s17 = scalar_lea.hbm %s1084_s0, 256 }
  0x37   : > { %p773_p1 = scmp.lt.s32.totalorder %s998_s8, %s1084_s0  ;;  %p774_p2 = scmp.lt.s32.totalorder %s772_s17, %s767_s13 }
  0x38   : > { %p770_p5 = pnand %p769_p0, %p768_p13 }
  0x39   : > { %p775_p6 = por %p774_p2, %p773_p1 }
  0x3a   : > { %p771_p10 = pneg %p770_p5 }
  0x3c   : > { %p776_p12 = pnand %p775_p6, %p771_p10 }
  0x3e   : > { %779 = shalt.err (!%p776_p12)
}
  0x3f   : > { %s780_s6 = scalar_lea.vmem %s220_s10, 128  ;;  %s869_s28 = smov [#allocation2]  }
  0x40   : > { %p781_p7 = scmp.ne.s32.totalorder %s220_s10, %s780_s6  ;;  %s785_s7 = sshll.u32 %s869_s28, 4  ;;  %s786_s7 = int_to_ptr.vmem [resolvable:$false] %s785_s7 }
  0x41   : > { %s787_s9 = scalar_lea.vmem %s786_s7, 256  ;;  %p788_p13 = scmp.lt.s32.totalorder %s220_s10, %s786_s7 }
  0x42   : > { %p783_p9 = pnand %p781_p7, %p769_p0  ;;  %p789_p5 = scmp.lt.s32.totalorder %s787_s9, %s780_s6 }
  0x44   : > { %p784_p3 = pneg %p783_p9  ;;  %p790_p4 = por %p789_p5, %p788_p13 }
  0x46   : > { %p791_p8 = pnand %p790_p4, %p784_p3 }
  0x48   : > { %794 = shalt.err (!%p791_p8)
}
  0x49   : > { %652 = dma.hbm_to_vmem [thread:$0]  (!%p1000_p11), %s998_s8, 128, %s220_s10, %s209_s12  }
  0x4a   : > { %p1101_p10 = scmp.ne.s32.totalorder %s1096_s26, 0 }
  0x4b   : > { %s1021_s13 = sand.u32 (!%p1101_p10), 1, %s855_s19   ;;  %p1102_p4 = scmp.ne.s32.totalorder (!%p1101_p10), %s1094_s24, 0 }
  0x4c   : > { %228 = sbr.rel (%p1101_p10) target bundleno = 536 (0x218), region = 40  ;;  %s569_s14 = sshll.u32 (!%p1101_p10), %s1021_s13, 3 }
  0x4d   : > { %s231_s16 = scalar_lea.sflag (!%p1101_p10), [#allocation3], %s1021_s13  ;;  %s234_s17 = scalar_lea.vmem (!%p1101_p10), [#allocation2], %s569_s14 }
  0x51   : > { %838 = dma.done.wait (%p1102_p4), %s231_s16, 128  }
  0x52   : > { %840 = vsyncadd (%p1102_p4), %s231_s16, 4294967168  ;;  %p1103_p8 = scmp.eq.s32.totalorder %s924_s22, 0 }
  0x54   : > { %842 = dma.done.wait (%p1103_p8), [#allocation6], 1280   ;;  %p1104_p3 = pmov %p1103_p8 }
  0x55   : > { %v870_v0 = vmov 0.0   ;;  %vm871_vm0 = vmmov 0   ;;  %v701_v1 = vld [vmem:[#allocation5 + $0x8] sm:$0xff]   ;;  %v702_v2 = vld [vmem:[#allocation5] sm:$0xff]   ;;  %v270_v3 = vld [vmem:[%s234_s17] sm:$0xff]  ;;  %vm295_vm1 = vcmask 261120  }
  0x56   : > { %844 = vsyncadd (%p1104_p3), [#allocation6], 4294966016  ;;  %602 = vmatprep.subr.bf16.mxu0 %v870_v0  ;;  %606 = vmatprep.mubr.msk.bf16.mxu0 %vm871_vm0, %v870_v0  ;;  %v703_v4 = vld [vmem:[#allocation7 + $0x38] sm:$0xff]   ;;  %v271_v5 = vpack.c.bf16 %v270_v3, %v270_v3  ;;  %v704_v6 = vld [vmem:[#allocation7 + $0x30] sm:$0xff]   ;;  %s587_s11 = sshll.u32 %s924_s22, 7  ;;  %s268_s12 = scalar_lea.vmem [#allocation8], %s569_s14 }
  0x57   : > { %610 = vmatprep.subr.bf16.mxu1 %v870_v0  ;;  %626 = vmatprep.mubr.msk.bf16.mxu1 %vm871_vm0, %v870_v0  ;;  %v705_v7 = vld [vmem:[#allocation7 + $0x28] sm:$0xff]   ;;  %v706_v8 = vld [vmem:[#allocation7 + $0x20] sm:$0xff]   ;;  %v707_v9 = vld [vmem:[#allocation7 + $0x18] sm:$0xff]   ;;  %s472_s30 = sshll.u32 %s268_s12, 4  ;;  %s1047_s28 = scalar_lea.hbm %s1089_s5, %s587_s11  ;;  %s473_s30 = int_to_ptr.vmem [resolvable:$true] %s472_s30 }
  0x58   : > { %603 = vmatpush3.bf16.msra.mxu0 %v701_v1  ;;  %611 = vmatpush3.bf16.msra.mxu1 %v703_v4  ;;  %v708_v10 = vld [vmem:[#allocation7 + $0x10] sm:$0xff]   ;;  %v709_v11 = vld [vmem:[#allocation7 + $0x8] sm:$0xff]   ;;  %v710_v12 = vld [vmem:[#allocation7] sm:$0xff]   ;;  %s459_s7 = scalar_lea.sflag [#allocation4], %s1021_s13  ;;  %s795_s9 = scalar_lea.vmem %s473_s30, 128 }
  0x59   : > { %604 = vmatprep.subr.bf16.mxu0 %v870_v0  ;;  %612 = vmatprep.subr.bf16.mxu1 %v870_v0  ;;  %v573_v13 = vld [vmem:[%s1086_s2] ss:$0 sm:$0xff]  ;;  %p796_p11 = scmp.ne.s32.totalorder %s473_s30, %s795_s9  ;;  %p1105_p0 = scmp.ne.s32.totalorder %s1099_s23, 0 }
  0x5a   : > { %v577_v21 = vld [vmem:[%s1088_s4] ss:$0 sm:$0xff]  ;;  %s872_s16 = smov [#allocation8]  }
  0x5b   : > { %p797_p1 = pnand %p796_p11, %p1105_p0  ;;  %s799_s17 = sshll.u32 %s872_s16, 4  ;;  %s800_s17 = int_to_ptr.vmem [resolvable:$false] %s799_s17 }
  0x5c   : > { %605 = vmatpush3.bf16.msra.mxu0 %v702_v2  ;;  %613 = vmatpush3.bf16.msra.mxu1 %v704_v6  ;;  %s801_s22 = scalar_lea.vmem %s800_s17, 256  ;;  %p802_p6 = scmp.lt.s32.totalorder %s473_s30, %s800_s17 }
  0x5d   : > { %614 = vmatprep.subr.bf16.mxu1 %v870_v0  ;;  %p798_p2 = pneg %p797_p1  ;;  %p803_p12 = scmp.lt.s32.totalorder %s801_s22, %s795_s9 }
  0x5f   : > { %607 = vmatmul.mubr.msk.bf16.vlgmr.msra.gmra.mxu0 %vm295_vm1, %v271_v5  ;;  %p804_p7 = por %p803_p12, %p802_p6 }
  0x60   : > { %615 = vmatpush3.bf16.msra.mxu1 %v705_v7 }
  0x61   : > { %616 = vmatprep.subr.bf16.mxu1 %v870_v0  ;;  %p805_p9 = pnand %p804_p7, %p798_p2 }
  0x64   : > { %617 = vmatpush3.bf16.msra.mxu1 %v706_v8 }
  0x65   : > { %618 = vmatprep.subr.bf16.mxu1 %v870_v0 }
  0x68   : > { %619 = vmatpush3.bf16.msra.mxu1 %v707_v9 }
  0x69   : > { %620 = vmatprep.subr.bf16.mxu1 %v870_v0 }
  0x6c   : > { %621 = vmatpush3.bf16.msra.mxu1 %v708_v10 }
  0x6d   : > { %622 = vmatprep.subr.bf16.mxu1 %v870_v0 }
  0x70   : > { %623 = vmatpush3.bf16.msra.mxu1 %v709_v11 }
  0x71   : > { %624 = vmatprep.subr.bf16.mxu1 %v870_v0 }
  0x74   : > { %625 = vmatpush3.bf16.msra.mxu1 %v710_v12 }
 0x11f   : > { %v333_v14 = vpop.f32.mrf.mxu0 }
 0x120   : > { %v334_v15 = vadd.f32 %v573_v13, %v333_v14 }
 0x121   : > { %v608_v16 = vpop.f32.mrf.mxu0 }
 0x122   : > { %v339_v17 = vmax.f32 %v334_v15, 0.0 }
 0x123   : > { %v336_v18 = vpop.f32.mrf.mxu0 }
 0x124   : > { %v340_v19 = vpack.c.bf16 %v339_v17, %v339_v17 }
 0x125   : > { %v609_v20 = vpop.f32.mrf.mxu0 }
 0x126   : > { %627 = vmatmul.mubr.bf16.vlgmr.msra.gmra.mxu1 %v340_v19 }
 0x1e6   : > { %v446_v22 = vpop.f32.mrf.mxu1 }
 0x1e7   : > { %v447_v23 = vadd.f32 %v577_v21, %v446_v22 }
 0x1e8   : > { %v628_v24 = vpop.f32.mrf.mxu1 }
 0x1e9   : > { %v452_v25 = vsub.f32 0.0, %v447_v23 }
 0x1ea   : > { %v449_v26 = vpop.f32.mrf.mxu1 }
 0x1eb   : > { %v453_v27 = vmul.f32 1.442695, %v452_v25 }
 0x1ec   : > { %v629_v28 = vpop.f32.mrf.mxu1 }
 0x1ed   : > { %711 = vpow2.f32 %v453_v27 }
 0x1fa   : > { %v712_v29 = vpop.eup %711 }
 0x1fb   : > { %v455_v30 = vadd.f32 1.0, %v712_v29 }
 0x1fd   : > { %713 = vrcp.f32 %v455_v30 }
 0x20a   : > { %v714_v31 = vpop.eup %713 }
 0x20b   : > { %457 = vst [vmem:[%s268_s12] sm:$0xff] %v714_v31 }
 0x20c   : > { %808 = shalt.err (!%p805_p9)
}
 0x20d   : > { %s809_s14 = scalar_lea.hbm %s1047_s28, 128  ;;  %s813_s26 = scalar_lea.hbm %s1089_s5, 256 }
 0x20e   : > { %p810_p13 = scmp.ne.s32.totalorder %s1047_s28, %s809_s14  ;;  %p814_p4 = scmp.lt.s32.totalorder %s1047_s28, %s1089_s5 }
 0x20f   : > { %p815_p8 = scmp.lt.s32.totalorder %s813_s26, %s809_s14 }
 0x210   : > { %p811_p5 = pnand %p810_p13, %p1105_p0 }
 0x211   : > { %p816_p3 = por %p815_p8, %p814_p4 }
 0x212   : > { %p812_p10 = pneg %p811_p5 }
 0x214   : > { %p817_p11 = pnand %p816_p3, %p812_p10 }
 0x216   : > { %820 = shalt.err (!%p817_p11)
}
 0x217   : > { %640 = dma.vmem_to_hbm [thread:$0]  (%p1105_p0), %s473_s30, 128, %s1047_s28, %s459_s7  }
 0x218 PF: > { %s484_s11 = sand.u32 1, %s851_s18   ;;  %p1106_p1 = scmp.ne.s32.totalorder %s1095_s25, 0 }
 0x219   : > { %p1107_p2 = scmp.ge.s32.totalorder %s863_s21, 2  ;;  %s485_s12 = scalar_lea.sflag [#allocation4], %s484_s11 }
 0x21b   : > { %p654_p6 = pnand %p1107_p2, %p1106_p1 }
 0x21d   : > { %p655_p12 = pneg %p654_p6 }
 0x21f   : > { %846 = dma.done.wait (%p655_p12), %s485_s12, 128  }
 0x220   : > { %848 = vsyncadd (%p655_p12), %s485_s12, 4294967168  ;;  %p19_p7 = scmp.ge.s32.totalorder %s975_s15, 4   ;;  %s1108_s18 = smov %s855_s19 }
 0x221   : > { %s1109_s19 = smov %s859_s20  ;;  %s1110_s20 = smov %s991_s27 }
 0x222   : > { %s1111_s21 = smov %s975_s15  ;;  %21 = sbr.rel (!%p19_p7) target bundleno = 6 (0x6), region = 93 }
 0x227   :  { %490 = vsyncpa [#allocation3], 1 }
 0x228   :  { %492 = vsyncpa [#allocation3 + $0x1], 1 }
 0x229   :  { %493 = vsyncpa [#allocation6], 1 }
 0x22a   :  { %494 = vsyncpa [#allocation4], 1 }
 0x22b   :  { %496 = vsyncpa [#allocation4 + $0x1], 1 }

// kernel: tpu_custom_call.1
= control target key start
LH: loop header
LB: loop body
LE: loop exit
PB: predicated region body
PF: predicated region fallthrough
CT: control target
= control target key end

     0   :  { %10 = vsyncpa [#allocation3], 0  ;;  %s1084_s0 = inlined_call_operand.hbm [shape: f32[16,32], index: 0, kind: input, shape index: {}]   ;;  %s1085_s1 = inlined_call_operand.hbm [shape: bf16[32,128], index: 1, kind: input, shape index: {}]   ;;  %s1086_s2 = inlined_call_operand.vmem [shape: f32[1,128], index: 2, kind: input, shape index: {}]   ;;  %s1087_s3 = inlined_call_operand.hbm [shape: bf16[128,128], index: 3, kind: input, shape index: {}]   ;;  %s1088_s4 = inlined_call_operand.vmem [shape: f32[1,128], index: 4, kind: input, shape index: {}]   ;;  %s1089_s5 = inlined_call_operand.hbm [shape: f32[16,128], index: 5, kind: output, shape index: {}]  }
   0x1   :  { %12 = vsyncpa [#allocation3 + $0x1], 0 }
   0x2   :  { %13 = vsyncpa [#allocation6], 0 }
   0x3   :  { %14 = vsyncpa [#allocation4], 0 }
   0x4   :  { %16 = vsyncpa [#allocation4 + $0x1], 0  ;;  %s903_s18 = smov 0   ;;  %s905_s19 = smov 0  }
   0x5   :  { %s907_s20 = smov 0   ;;  %s909_s21 = smov 0  }
   0x6 LB: > { %s924_s22 = sadd.s32 4294967295, %s863_s21   ;;  %s561_s23 = sadd.s32 4294967294, %s863_s21   ;;  %s863_s21 = sphi %s909_s21, %s1111_s21   ;;  %s859_s20 = sphi %s907_s20, %s1110_s20   ;;  %s855_s19 = sphi %s905_s19, %s1109_s19   ;;  %s851_s18 = sphi %s903_s18, %s1108_s18  }
   0x7   : > { %p42_p0 = scmp.ne.s32.totalorder %s855_s19, %s851_s18  ;;  %p1090_p1 = scmp.eq.s32.totalorder %s924_s22, 0 }
   0x8   : > { %p156_p3 = scmp.eq.s32.totalorder %s561_s23, 1  ;;  %p562_p5 = scmp.ge.s32.totalorder %s863_s21, 1 }
   0x9   : > { %p933_p4 = por %p1090_p1, %p42_p0  ;;  %p163_p7 = scmp.lt.s32.totalorder %s863_s21, 3 }
   0xa   : > { %p938_p6 = por %p156_p3, %p42_p0  ;;  %s865_s27 = smov [#allocation5]  }
   0xb   : > { %s1094_s24 = scalar_select %p933_p4, 1, 0 }
   0xc   : > { %s1095_s25 = scalar_select %p938_p6, 1, 0 }
   0xd   : > { %p943_p8 = pnand %p562_p5, %p163_p7  ;;  %s175_s28 = sshll.u32 %s865_s27, 4  ;;  %s176_s28 = int_to_ptr.vmem [resolvable:$true] %s175_s28 }
   0xe   : > { %s866_s30 = smov [#allocation7]   ;;  %s726_s7 = scalar_lea.vmem %s176_s28, 256 }
   0xf   : > { %s1096_s26 = scalar_select %p943_p8, 1, 0 }
  0x10   : > { %p642_p9 = pneg %p943_p8  ;;  %s191_s6 = sshll.u32 %s866_s30, 4  ;;  %s192_s6 = int_to_ptr.vmem [resolvable:$true] %s191_s6 }
  0x11   : > { %p727_p13 = scmp.ne.s32.totalorder %s176_s28, %s726_s7  ;;  %p734_p5 = scmp.lt.s32.totalorder %s176_s28, %s176_s28 }
  0x12   : > { %p952_p11 = pnand %p642_p9, %p1090_p1  ;;  %p735_p7 = scmp.lt.s32.totalorder %s726_s7, %s726_s7 }
  0x14   : > { %p717_p12 = pneg %p952_p11  ;;  %p736_p10 = por %p735_p7, %p734_p5 }
  0x16   : > { %p729_p0 = pnand %p727_p13, %p717_p12 }
  0x18   : > { %p730_p3 = pneg %p729_p0 }
  0x1a   : > { %p737_p9 = pnand %p736_p10, %p730_p3 }
  0x1c   : > { %740 = shalt.err (!%p737_p9)
}
  0x1d   : > { %s867_s8 = smov 64   ;;  %s868_s9 = smov 4  }
  0x1e   : > { %645 = dma.hbm_to_vmem [thread:$0]  (!%p952_p11), %s1085_s1, 256, %s176_s28, [#allocation6], %s867_s8, %s867_s8, %s868_s9  }
  0x1f   : > { %s752_s12 = scalar_lea.vmem %s192_s6, 1024  ;;  %p760_p2 = scmp.lt.s32.totalorder %s192_s6, %s192_s6 }
  0x20   : > { %p753_p1 = scmp.ne.s32.totalorder %s192_s6, %s752_s12  ;;  %p761_p6 = scmp.lt.s32.totalorder %s752_s12, %s752_s12 }
  0x22   : > { %p755_p13 = pnand %p753_p1, %p717_p12  ;;  %p762_p5 = por %p761_p6, %p760_p2 }
  0x24   : > { %p756_p0 = pneg %p755_p13 }
  0x26   : > { %p763_p10 = pnand %p762_p5, %p756_p0 }
  0x28   : > { %766 = shalt.err (!%p763_p10)
}
  0x29   : > { %648 = dma.hbm_to_vmem [thread:$0]  (!%p952_p11), %s1087_s3, 1024, %s192_s6, [#allocation6], %s867_s8, %s867_s8, %s868_s9  }
  0x2a   : > { %s975_s15 = sadd.s32 1, %s863_s21   ;;  %s29_s16 = sadd.s32 1, %s859_s20 }
  0x2b   : > { %s26_s17 = ssub.s32 %s863_s21, %s975_s15  ;;  %p36_p1 = scmp.ne.s32.totalorder %s859_s20, %s855_s19 }
  0x2c   : > { %p27_p2 = scmp.eq.s32.totalorder %s26_s17, 0  ;;  %p37_p6 = scmp.eq.s32.totalorder %s863_s21, 0 }
  0x2d   : > { %p1098_p12 = scmp.eq.s32.totalorder %s924_s22, 1  ;;  %p659_p7 = scmp.lt.s32.totalorder %s863_s21, 2 }
  0x2e   : > { %s991_s27 = scalar_select %p27_p2, %s859_s20, %s29_s16  }
  0x2f   : > { %p985_p3 = por %p1098_p12, %p36_p1  ;;  %p38_p9 = por %p37_p6, %p36_p1 }
  0x30   : > { %s208_s28 = sand.u32 1, %s859_s20   ;;  %s567_s30 = sshll.u32 %s863_s21, 7 }
  0x31   : > { %s1099_s23 = scalar_select %p985_p3, 1, 0 }
  0x32   : > { %s566_s29 = sshll.u32 %s208_s28, 3  ;;  %s998_s8 = scalar_lea.hbm %s1084_s0, %s567_s30 }
  0x33   : > { %s212_s9 = scalar_lea.vmem [#allocation2], %s566_s29  ;;  %p1000_p11 = pnand %p659_p7, %p38_p9 }
  0x34   : > { %s219_s10 = sshll.u32 %s212_s9, 4  ;;  %s209_s12 = scalar_lea.sflag [#allocation3], %s208_s28  ;;  %s220_s10 = int_to_ptr.vmem [resolvable:$true] %s219_s10 }
  0x35   : > { %s767_s13 = scalar_lea.hbm %s998_s8, 128  ;;  %p769_p0 = pneg %p1000_p11 }
  0x36   : > { %p768_p13 = scmp.ne.s32.totalorder %s998_s8, %s767_s13  ;;  %s772_s17 = scalar_lea.hbm %s1084_s0, 256 }
  0x37   : > { %p773_p1 = scmp.lt.s32.totalorder %s998_s8, %s1084_s0  ;;  %p774_p2 = scmp.lt.s32.totalorder %s772_s17, %s767_s13 }
  0x38   : > { %p770_p5 = pnand %p769_p0, %p768_p13 }
  0x39   : > { %p775_p6 = por %p774_p2, %p773_p1 }
  0x3a   : > { %p771_p10 = pneg %p770_p5 }
  0x3c   : > { %p776_p12 = pnand %p775_p6, %p771_p10 }
  0x3e   : > { %779 = shalt.err (!%p776_p12)
}
  0x3f   : > { %s780_s6 = scalar_lea.vmem %s220_s10, 128  ;;  %s869_s28 = smov [#allocation2]  }
  0x40   : > { %p781_p7 = scmp.ne.s32.totalorder %s220_s10, %s780_s6  ;;  %s785_s7 = sshll.u32 %s869_s28, 4  ;;  %s786_s7 = int_to_ptr.vmem [resolvable:$false] %s785_s7 }
  0x41   : > { %s787_s9 = scalar_lea.vmem %s786_s7, 256  ;;  %p788_p13 = scmp.lt.s32.totalorder %s220_s10, %s786_s7 }
  0x42   : > { %p783_p9 = pnand %p781_p7, %p769_p0  ;;  %p789_p5 = scmp.lt.s32.totalorder %s787_s9, %s780_s6 }
  0x44   : > { %p784_p3 = pneg %p783_p9  ;;  %p790_p4 = por %p789_p5, %p788_p13 }
  0x46   : > { %p791_p8 = pnand %p790_p4, %p784_p3 }
  0x48   : > { %794 = shalt.err (!%p791_p8)
}
  0x49   : > { %652 = dma.hbm_to_vmem [thread:$0]  (!%p1000_p11), %s998_s8, 128, %s220_s10, %s209_s12  }
  0x4a   : > { %p1101_p10 = scmp.ne.s32.totalorder %s1096_s26, 0 }
  0x4b   : > { %s1021_s13 = sand.u32 (!%p1101_p10), 1, %s855_s19   ;;  %p1102_p4 = scmp.ne.s32.totalorder (!%p1101_p10), %s1094_s24, 0 }
  0x4c   : > { %228 = sbr.rel (%p1101_p10) target bundleno = 536 (0x218), region = 40  ;;  %s569_s14 = sshll.u32 (!%p1101_p10), %s1021_s13, 3 }
  0x4d   : > { %s231_s16 = scalar_lea.sflag (!%p1101_p10), [#allocation3], %s1021_s13  ;;  %s234_s17 = scalar_lea.vmem (!%p1101_p10), [#allocation2], %s569_s14 }
  0x51   : > { %838 = dma.done.wait (%p1102_p4), %s231_s16, 128  }
  0x52   : > { %840 = vsyncadd (%p1102_p4), %s231_s16, 4294967168  ;;  %p1103_p8 = scmp.eq.s32.totalorder %s924_s22, 0 }
  0x54   : > { %842 = dma.done.wait (%p1103_p8), [#allocation6], 1280   ;;  %p1104_p3 = pmov %p1103_p8 }
  0x55   : > { %v870_v0 = vmov 0.0   ;;  %vm871_vm0 = vmmov 0   ;;  %v701_v1 = vld [vmem:[#allocation5 + $0x8] sm:$0xff]   ;;  %v702_v2 = vld [vmem:[#allocation5] sm:$0xff]   ;;  %v270_v3 = vld [vmem:[%s234_s17] sm:$0xff]  ;;  %vm295_vm1 = vcmask 261120  }
  0x56   : > { %844 = vsyncadd (%p1104_p3), [#allocation6], 4294966016  ;;  %602 = vmatprep.subr.bf16.mxu0 %v870_v0  ;;  %606 = vmatprep.mubr.msk.bf16.mxu0 %vm871_vm0, %v870_v0  ;;  %v703_v4 = vld [vmem:[#allocation7 + $0x38] sm:$0xff]   ;;  %v271_v5 = vpack.c.bf16 %v270_v3, %v270_v3  ;;  %v704_v6 = vld [vmem:[#allocation7 + $0x30] sm:$0xff]   ;;  %s587_s11 = sshll.u32 %s924_s22, 7  ;;  %s268_s12 = scalar_lea.vmem [#allocation8], %s569_s14 }
  0x57   : > { %610 = vmatprep.subr.bf16.mxu1 %v870_v0  ;;  %626 = vmatprep.mubr.msk.bf16.mxu1 %vm871_vm0, %v870_v0  ;;  %v705_v7 = vld [vmem:[#allocation7 + $0x28] sm:$0xff]   ;;  %v706_v8 = vld [vmem:[#allocation7 + $0x20] sm:$0xff]   ;;  %v707_v9 = vld [vmem:[#allocation7 + $0x18] sm:$0xff]   ;;  %s472_s30 = sshll.u32 %s268_s12, 4  ;;  %s1047_s28 = scalar_lea.hbm %s1089_s5, %s587_s11  ;;  %s473_s30 = int_to_ptr.vmem [resolvable:$true] %s472_s30 }
  0x58   : > { %603 = vmatpush3.bf16.msra.mxu0 %v701_v1  ;;  %611 = vmatpush3.bf16.msra.mxu1 %v703_v4  ;;  %v708_v10 = vld [vmem:[#allocation7 + $0x10] sm:$0xff]   ;;  %v709_v11 = vld [vmem:[#allocation7 + $0x8] sm:$0xff]   ;;  %v710_v12 = vld [vmem:[#allocation7] sm:$0xff]   ;;  %s459_s7 = scalar_lea.sflag [#allocation4], %s1021_s13  ;;  %s795_s9 = scalar_lea.vmem %s473_s30, 128 }
  0x59   : > { %604 = vmatprep.subr.bf16.mxu0 %v870_v0  ;;  %612 = vmatprep.subr.bf16.mxu1 %v870_v0  ;;  %v573_v13 = vld [vmem:[%s1086_s2] ss:$0 sm:$0xff]  ;;  %p796_p11 = scmp.ne.s32.totalorder %s473_s30, %s795_s9  ;;  %p1105_p0 = scmp.ne.s32.totalorder %s1099_s23, 0 }
  0x5a   : > { %v577_v21 = vld [vmem:[%s1088_s4] ss:$0 sm:$0xff]  ;;  %s872_s16 = smov [#allocation8]  }
  0x5b   : > { %p797_p1 = pnand %p796_p11, %p1105_p0  ;;  %s799_s17 = sshll.u32 %s872_s16, 4  ;;  %s800_s17 = int_to_ptr.vmem [resolvable:$false] %s799_s17 }
  0x5c   : > { %605 = vmatpush3.bf16.msra.mxu0 %v702_v2  ;;  %613 = vmatpush3.bf16.msra.mxu1 %v704_v6  ;;  %s801_s22 = scalar_lea.vmem %s800_s17, 256  ;;  %p802_p6 = scmp.lt.s32.totalorder %s473_s30, %s800_s17 }
  0x5d   : > { %614 = vmatprep.subr.bf16.mxu1 %v870_v0  ;;  %p798_p2 = pneg %p797_p1  ;;  %p803_p12 = scmp.lt.s32.totalorder %s801_s22, %s795_s9 }
  0x5f   : > { %607 = vmatmul.mubr.msk.bf16.vlgmr.msra.gmra.mxu0 %vm295_vm1, %v271_v5  ;;  %p804_p7 = por %p803_p12, %p802_p6 }
  0x60   : > { %615 = vmatpush3.bf16.msra.mxu1 %v705_v7 }
  0x61   : > { %616 = vmatprep.subr.bf16.mxu1 %v870_v0  ;;  %p805_p9 = pnand %p804_p7, %p798_p2 }
  0x64   : > { %617 = vmatpush3.bf16.msra.mxu1 %v706_v8 }
  0x65   : > { %618 = vmatprep.subr.bf16.mxu1 %v870_v0 }
  0x68   : > { %619 = vmatpush3.bf16.msra.mxu1 %v707_v9 }
  0x69   : > { %620 = vmatprep.subr.bf16.mxu1 %v870_v0 }
  0x6c   : > { %621 = vmatpush3.bf16.msra.mxu1 %v708_v10 }
  0x6d   : > { %622 = vmatprep.subr.bf16.mxu1 %v870_v0 }
  0x70   : > { %623 = vmatpush3.bf16.msra.mxu1 %v709_v11 }
  0x71   : > { %624 = vmatprep.subr.bf16.mxu1 %v870_v0 }
  0x74   : > { %625 = vmatpush3.bf16.msra.mxu1 %v710_v12 }
 0x11f   : > { %v333_v14 = vpop.f32.mrf.mxu0 }
 0x120   : > { %v334_v15 = vadd.f32 %v573_v13, %v333_v14 }
 0x121   : > { %v608_v16 = vpop.f32.mrf.mxu0 }
 0x122   : > { %v339_v17 = vmax.f32 %v334_v15, 0.0 }
 0x123   : > { %v336_v18 = vpop.f32.mrf.mxu0 }
 0x124   : > { %v340_v19 = vpack.c.bf16 %v339_v17, %v339_v17 }
 0x125   : > { %v609_v20 = vpop.f32.mrf.mxu0 }
 0x126   : > { %627 = vmatmul.mubr.bf16.vlgmr.msra.gmra.mxu1 %v340_v19 }
 0x1e6   : > { %v446_v22 = vpop.f32.mrf.mxu1 }
 0x1e7   : > { %v447_v23 = vadd.f32 %v577_v21, %v446_v22 }
 0x1e8   : > { %v628_v24 = vpop.f32.mrf.mxu1 }
 0x1e9   : > { %v452_v25 = vsub.f32 0.0, %v447_v23 }
 0x1ea   : > { %v449_v26 = vpop.f32.mrf.mxu1 }
 0x1eb   : > { %v453_v27 = vmul.f32 1.442695, %v452_v25 }
 0x1ec   : > { %v629_v28 = vpop.f32.mrf.mxu1 }
 0x1ed   : > { %711 = vpow2.f32 %v453_v27 }
 0x1fa   : > { %v712_v29 = vpop.eup %711 }
 0x1fb   : > { %v455_v30 = vadd.f32 1.0, %v712_v29 }
 0x1fd   : > { %713 = vrcp.f32 %v455_v30 }
 0x20a   : > { %v714_v31 = vpop.eup %713 }
 0x20b   : > { %457 = vst [vmem:[%s268_s12] sm:$0xff] %v714_v31 }
 0x20c   : > { %808 = shalt.err (!%p805_p9)
}
 0x20d   : > { %s809_s14 = scalar_lea.hbm %s1047_s28, 128  ;;  %s813_s26 = scalar_lea.hbm %s1089_s5, 256 }
 0x20e   : > { %p810_p13 = scmp.ne.s32.totalorder %s1047_s28, %s809_s14  ;;  %p814_p4 = scmp.lt.s32.totalorder %s1047_s28, %s1089_s5 }
 0x20f   : > { %p815_p8 = scmp.lt.s32.totalorder %s813_s26, %s809_s14 }
 0x210   : > { %p811_p5 = pnand %p810_p13, %p1105_p0 }
 0x211   : > { %p816_p3 = por %p815_p8, %p814_p4 }
 0x212   : > { %p812_p10 = pneg %p811_p5 }
 0x214   : > { %p817_p11 = pnand %p816_p3, %p812_p10 }
 0x216   : > { %820 = shalt.err (!%p817_p11)
}
 0x217   : > { %640 = dma.vmem_to_hbm [thread:$0]  (%p1105_p0), %s473_s30, 128, %s1047_s28, %s459_s7  }
 0x218 PF: > { %s484_s11 = sand.u32 1, %s851_s18   ;;  %p1106_p1 = scmp.ne.s32.totalorder %s1095_s25, 0 }
 0x219   : > { %p1107_p2 = scmp.ge.s32.totalorder %s863_s21, 2  ;;  %s485_s12 = scalar_lea.sflag [#allocation4], %s484_s11 }
 0x21b   : > { %p654_p6 = pnand %p1107_p2, %p1106_p1 }
 0x21d   : > { %p655_p12 = pneg %p654_p6 }
 0x21f   : > { %846 = dma.done.wait (%p655_p12), %s485_s12, 128  }
 0x220   : > { %848 = vsyncadd (%p655_p12), %s485_s12, 4294967168  ;;  %p19_p7 = scmp.ge.s32.totalorder %s975_s15, 4   ;;  %s1108_s18 = smov %s855_s19 }
 0x221   : > { %s1109_s19 = smov %s859_s20  ;;  %s1110_s20 = smov %s991_s27 }
 0x222   : > { %s1111_s21 = smov %s975_s15  ;;  %21 = sbr.rel (!%p19_p7) target bundleno = 6 (0x6), region = 93 }
 0x227   :  { %490 = vsyncpa [#allocation3], 1 }
 0x228   :  { %492 = vsyncpa [#allocation3 + $0x1], 1 }
 0x229   :  { %493 = vsyncpa [#allocation6], 1 }
 0x22a   :  { %494 = vsyncpa [#allocation4], 1 }
 0x22b   :  { %496 = vsyncpa [#allocation4 + $0x1], 1 }

</bundles_post_ra>
